<compile_context>
chip_gen: v6e
topology: v6e:2x2x1
jax: 0.10.0
libtpu: 0.0.40
codegen_flags: <defaults>
</compile_context>

<pallas_src>
import functools

import jax
import jax.numpy as jnp
from jax import lax
from jax.experimental import pallas as pl
from jax.experimental.pallas import tpu as pltpu

K1 = 5    # conv1 kernel size (padding 2)
K2 = 3    # conv2 kernel size (padding 1)
C1 = 32   # conv1 output channels
C2 = 64   # conv2 output channels


def _round8(n):
    return -(-n // 8) * 8


def _cartpole_kernel(x1_ref, w_ref, o_ref, *, B, Lh, C, offs):
    f32 = jnp.float32
    BLh = B * Lh
    o1, o2, o3, o4 = offs

    # ---- unpack the packed weight buffer (static VMEM views) -------------
    w1 = w_ref[o1:o1 + C * K1 + 1, 0:C1]        # (21, 32)  conv1 + bias row
    w2 = w_ref[o2:o2 + C1 * K2 + 1, 0:C2]       # (97, 64)  conv2 + bias row
    w3 = w_ref[o3:o3 + C2 * Lh + 1, 0:C2]       # (513, 64) fc1   + bias row
    w4 = w_ref[o4:o4 + C2 + 1, 0:1]             # (65, 1)   fc2   + bias row

    # ---- conv1 (+bias) as one im2col matmul, ReLU -------------------------
    # x1 rows are ordered (parity, b, m) with l = 2*m + parity.
    h1 = jnp.maximum(
        jnp.dot(x1_ref[...], w1, preferred_element_type=f32), 0.0)   # (B*L, 32)

    # ---- MaxPool1d(2): max of the two parity halves (pure VPU) ------------
    hp = jnp.maximum(h1[:BLh, :], h1[BLh:, :])                        # (B*Lh, 32)

    # ---- conv2 (+bias) as one im2col matmul -------------------------------
    # Shifted neighbours along m with per-sample zero boundaries (padding=1).
    ridx = lax.broadcasted_iota(jnp.int32, (BLh, 1), 0) % Lh
    not_first = (ridx != 0).astype(f32)
    not_last = (ridx != Lh - 1).astype(f32)
    zrow = jnp.zeros((1, C1), f32)
    hp_prev = jnp.concatenate([zrow, hp[:-1, :]], axis=0) * not_first
    hp_next = jnp.concatenate([hp[1:, :], zrow], axis=0) * not_last
    ones_col = jnp.ones((BLh, 1), f32)
    x2 = jnp.concatenate([hp_prev, hp, hp_next, ones_col], axis=1)    # (B*Lh, 97)
    h2 = jnp.maximum(
        jnp.dot(x2, w2, preferred_element_type=f32), 0.0)             # (B*Lh, 64)

    # ---- flatten to (B, Lh*C2), lane order (m, c) --------------------------
    # (fc1 weight was pre-permuted to this order at parameter-load time.)
    samples = []
    for b in range(B):
        rows = [h2[b * Lh + m:b * Lh + m + 1, :] for m in range(Lh)]
        samples.append(jnp.concatenate(rows, axis=1))                 # (1, Lh*64)
    h2b = jnp.concatenate(samples, axis=0)                            # (B, 512)
    h2b = jnp.concatenate([h2b, jnp.ones((B, 1), f32)], axis=1)       # (B, 513)

    # ---- fc1 + ReLU, fc2 + sigmoid -----------------------------------------
    h3 = jnp.maximum(jnp.dot(h2b, w3, preferred_element_type=f32), 0.0)  # (B, 64)
    h3 = jnp.concatenate([h3, jnp.ones((B, 1), f32)], axis=1)            # (B, 65)
    z = jnp.dot(h3, w4, preferred_element_type=f32)                      # (B, 1)
    o_ref[...] = 1.0 / (1.0 + jnp.exp(-z))


def prepare_params(params, *, input_size, input_channels):
    """One-time (load-time) weight re-layout + packing for the kernel."""
    w1, b1, w2, b2, fw1, fb1, fw2, fb2 = params
    C = input_channels
    Lh = input_size // 2

    # conv1: rows k*C + c, plus bias row -> (C*K1+1, C1)
    w1a = jnp.concatenate(
        [jnp.transpose(w1, (2, 1, 0)).reshape(K1 * C, C1), b1[None, :]], axis=0)
    # conv2: rows k*C1 + c, plus bias row -> (C1*K2+1, C2)
    w2a = jnp.concatenate(
        [jnp.transpose(w2, (2, 1, 0)).reshape(K2 * C1, C2), b2[None, :]], axis=0)
    # fc1: torch flatten order is c*Lh + m; kernel lane order is m*C2 + c.
    w3a = jnp.concatenate(
        [fw1.reshape(C2, C2, Lh).transpose(2, 1, 0).reshape(Lh * C2, C2),
         fb1[None, :]], axis=0)
    # fc2 (+ bias) as a (C2+1, 1) column.
    w4a = jnp.concatenate([fw2.reshape(C2, 1), fb2.reshape(1, 1)], axis=0)

    # Pack everything into one (rows, C2) VMEM buffer at 8-aligned offsets.
    blocks, offs, off = [], [], 0
    for blk in (w1a, w2a, w3a, w4a):
        r, c = blk.shape
        offs.append(off)
        blocks.append(jnp.pad(blk.astype(jnp.float32),
                              ((0, _round8(r) - r), (0, C2 - c))))
        off += _round8(r)
    return jnp.concatenate(blocks, axis=0), tuple(offs)


def cartpole_forward(x, w_packed, *, offs):
    """x: (B, input_size, input_channels) float32, like the PyTorch forward."""
    B, L, C = x.shape
    assert L % 2 == 0, "MaxPool1d(2) path assumes an even input_size"
    Lh = L // 2

    # Per-call data prep: conv1 im2col with row order (parity, b, m),
    # l = 2*m + parity, plus a ones column that folds in the conv1 bias.
    x_pad = jnp.pad(x.astype(jnp.float32), ((0, 0), (K1 // 2, K1 // 2), (0, 0)))
    taps = jnp.stack([x_pad[:, k:k + L, :] for k in range(K1)], axis=2)  # (B,L,K1,C)
    taps = taps.reshape(B, Lh, 2, K1 * C)
    taps = jnp.transpose(taps, (2, 0, 1, 3)).reshape(B * L, K1 * C)
    x1 = jnp.concatenate([taps, jnp.ones((B * L, 1), jnp.float32)], axis=1)

    kernel = functools.partial(_cartpole_kernel, B=B, Lh=Lh, C=C, offs=offs)
    return pl.pallas_call(
        kernel,
        out_shape=jax.ShapeDtypeStruct((B, 1), jnp.float32),
        in_specs=[pl.BlockSpec(memory_space=pltpu.MemorySpace.VMEM)] * 2,
        out_specs=pl.BlockSpec(memory_space=pltpu.MemorySpace.VMEM),
    )(x1, w_packed)


def reference_forward(x, params):
    """Pure-JAX reference mirroring the PyTorch module exactly."""
    w1, b1, w2, b2, fw1, fb1, fw2, fb2 = params
    xt = jnp.transpose(x, (0, 2, 1))                                # (B, C, L)
    h = lax.conv_general_dilated(xt, w1, (1,), [(2, 2)],
                                 dimension_numbers=('NCH', 'OIH', 'NCH'),
                                 precision=lax.Precision.HIGHEST)
    h = jax.nn.relu(h + b1[None, :, None])
    B, C, L = h.shape
    h = jnp.max(h.reshape(B, C, L // 2, 2), axis=-1)                # MaxPool1d(2)
    h = lax.conv_general_dilated(h, w2, (1,), [(1, 1)],
                                 dimension_numbers=('NCH', 'OIH', 'NCH'),
                                 precision=lax.Precision.HIGHEST)
    h = jax.nn.relu(h + b2[None, :, None])
    h = h.reshape(B, -1)
    h = jax.nn.relu(h @ fw1.T + fb1)
    return jax.nn.sigmoid(h @ fw2.T + fb2)


if __name__ == "__main__":
    # Small shapes consistent with the module: input_size=16, input_channels=4.
    B, L, C = 2, 16, 4
    Lh = L // 2

    key = jax.random.PRNGKey(0)
    ks = jax.random.split(key, 9)
    params = (
        jax.random.normal(ks[0], (C1, C, K1), jnp.float32) * 0.1,    # conv1.weight
        jax.random.normal(ks[1], (C1,), jnp.float32) * 0.1,          # conv1.bias
        jax.random.normal(ks[2], (C2, C1, K2), jnp.float32) * 0.05,  # conv2.weight
        jax.random.normal(ks[3], (C2,), jnp.float32) * 0.1,          # conv2.bias
        jax.random.normal(ks[4], (C2, C2 * Lh), jnp.float32) * 0.05, # fc1.weight
        jax.random.normal(ks[5], (C2,), jnp.float32) * 0.1,          # fc1.bias
        jax.random.normal(ks[6], (1, C2), jnp.float32) * 0.1,        # fc2.weight
        jax.random.normal(ks[7], (1,), jnp.float32) * 0.1,           # fc2.bias
    )
    x = jax.random.normal(ks[8], (B, L, C), jnp.float32)             # (B, seq, channels)

    # One-time parameter re-layout / packing (hoisted out of the hot path).
    w_packed, offs = prepare_params(params, input_size=L, input_channels=C)
    fwd = jax.jit(functools.partial(cartpole_forward, offs=offs))

    out = jax.block_until_ready(fwd(x, w_packed))
    ref = jax.block_until_ready(reference_forward(x, params))

    assert out.shape == (B, 1), out.shape
    assert bool(jnp.allclose(out, ref, atol=1e-3, rtol=1e-2)), (out, ref)
    print("KERNEL_OK")
</pallas_src>

<mosaic_0001>
module attributes {stable_mosaic.version = 11 : i64} {
  func.func @_cartpole_kernel(%arg0: memref<32x21xf32, #tpu.memory_space<vmem>>, %arg1: memref<720x64xf32, #tpu.memory_space<vmem>>, %arg2: memref<2x1xf32, #tpu.memory_space<vmem>>) attributes {dimension_semantics = [], scalar_prefetch = 0 : i64, scratch_operands = 0 : i64, tpu.core_type = #tpu.core_type<tc>} {
    %c0 = arith.constant 0 : index
    %c0_0 = arith.constant 0 : index
    %0 = vector.load %arg1[%c0, %c0_0] : memref<720x64xf32, #tpu.memory_space<vmem>>, vector<21x32xf32>
    %c24 = arith.constant 24 : index
    %c0_1 = arith.constant 0 : index
    %1 = vector.load %arg1[%c24, %c0_1] : memref<720x64xf32, #tpu.memory_space<vmem>>, vector<97x64xf32>
    %c128 = arith.constant 128 : index
    %c0_2 = arith.constant 0 : index
    %2 = vector.load %arg1[%c128, %c0_2] : memref<720x64xf32, #tpu.memory_space<vmem>>, vector<513x64xf32>
    %c648 = arith.constant 648 : index
    %c0_3 = arith.constant 0 : index
    %3 = vector.load %arg1[%c648, %c0_3] : memref<720x64xf32, #tpu.memory_space<vmem>>, vector<65x1xf32>
    %c0_4 = arith.constant 0 : index
    %c0_5 = arith.constant 0 : index
    %4 = vector.load %arg0[%c0_4, %c0_5] : memref<32x21xf32, #tpu.memory_space<vmem>>, vector<32x21xf32>
    %cst = arith.constant dense<0.000000e+00> : vector<32x32xf32>
    %5 = tpu.matmul %4, %0, %cst {dimension_numbers = #tpu.dot_dimension_numbers<[1], [0], [0], [1], [0, 0, 1, 1], [], []>} : vector<32x21xf32>, vector<21x32xf32>, vector<32x32xf32> -> vector<32x32xf32>
    %cst_6 = arith.constant 0.000000e+00 : f32
    %6 = vector.broadcast %cst_6 : f32 to vector<32x32xf32>
    %7 = arith.maximumf %5, %6 : vector<32x32xf32>
    %8 = vector.extract_strided_slice %7 {offsets = [0, 0], sizes = [16, 32], strides = [1, 1]} : vector<32x32xf32> to vector<16x32xf32>
    %9 = vector.extract_strided_slice %7 {offsets = [16, 0], sizes = [16, 32], strides = [1, 1]} : vector<32x32xf32> to vector<16x32xf32>
    %10 = arith.maximumf %8, %9 : vector<16x32xf32>
    %11 = tpu.iota {dimensions = array<i32: 0>} : vector<16x1xi32>
    %c8_i32 = arith.constant 8 : i32
    %c0_i32 = arith.constant 0 : i32
    %12 = arith.cmpi eq, %c8_i32, %c0_i32 : i32
    %c1_i32 = arith.constant 1 : i32
    %13 = arith.select %12, %c1_i32, %c8_i32 : i32
    %14 = vector.broadcast %13 : i32 to vector<16x1xi32>
    %15 = arith.remsi %11, %14 : vector<16x1xi32>
    %c0_i32_7 = arith.constant 0 : i32
    %16 = vector.broadcast %c0_i32_7 : i32 to vector<16x1xi32>
    %17 = arith.cmpi ne, %15, %16 : vector<16x1xi32>
    %c0_i32_8 = arith.constant 0 : i32
    %18 = vector.broadcast %c0_i32_8 : i32 to vector<16x1xi32>
    %19 = arith.cmpi slt, %15, %18 : vector<16x1xi32>
    %c0_i32_9 = arith.constant 0 : i32
    %20 = arith.cmpi slt, %13, %c0_i32_9 : i32
    %21 = vector.broadcast %20 : i1 to vector<16x1xi1>
    %22 = vector.broadcast %21 : vector<16x1xi1> to vector<16x1xi1>
    %23 = arith.xori %19, %22 : vector<16x1xi1>
    %24 = arith.andi %23, %17 : vector<16x1xi1>
    %25 = vector.broadcast %13 : i32 to vector<16x1xi32>
    %26 = arith.addi %15, %25 : vector<16x1xi32>
    %27 = arith.select %24, %26, %15 : vector<16x1xi1>, vector<16x1xi32>
    %c0_i32_10 = arith.constant 0 : i32
    %28 = vector.broadcast %c0_i32_10 : i32 to vector<16x1xi32>
    %29 = arith.cmpi ne, %27, %28 : vector<16x1xi32>
    %30 = arith.extui %29 : vector<16x1xi1> to vector<16x1xi32>
    %31 = arith.sitofp %30 : vector<16x1xi32> to vector<16x1xf32>
    %c7_i32 = arith.constant 7 : i32
    %32 = vector.broadcast %c7_i32 : i32 to vector<16x1xi32>
    %33 = arith.cmpi ne, %27, %32 : vector<16x1xi32>
    %34 = arith.extui %33 : vector<16x1xi1> to vector<16x1xi32>
    %35 = arith.sitofp %34 : vector<16x1xi32> to vector<16x1xf32>
    %cst_11 = arith.constant 0.000000e+00 : f32
    %36 = vector.broadcast %cst_11 : f32 to vector<1x32xf32>
    %37 = vector.extract_strided_slice %10 {offsets = [0, 0], sizes = [15, 32], strides = [1, 1]} : vector<16x32xf32> to vector<15x32xf32>
    %38 = tpu.concatenate %36, %37 in 0 : vector<1x32xf32>, vector<15x32xf32> -> vector<16x32xf32>
    %39 = vector.broadcast %31 : vector<16x1xf32> to vector<16x32xf32>
    %40 = arith.mulf %38, %39 : vector<16x32xf32>
    %41 = vector.extract_strided_slice %10 {offsets = [1, 0], sizes = [15, 32], strides = [1, 1]} : vector<16x32xf32> to vector<15x32xf32>
    %42 = tpu.concatenate %41, %36 in 0 : vector<15x32xf32>, vector<1x32xf32> -> vector<16x32xf32>
    %43 = vector.broadcast %35 : vector<16x1xf32> to vector<16x32xf32>
    %44 = arith.mulf %42, %43 : vector<16x32xf32>
    %cst_12 = arith.constant 1.000000e+00 : f32
    %45 = vector.broadcast %cst_12 : f32 to vector<16x1xf32>
    %46 = tpu.concatenate %40, %10, %44, %45 in 1 : vector<16x32xf32>, vector<16x32xf32>, vector<16x32xf32>, vector<16x1xf32> -> vector<16x97xf32>
    %cst_13 = arith.constant dense<0.000000e+00> : vector<16x64xf32>
    %47 = tpu.matmul %46, %1, %cst_13 {dimension_numbers = #tpu.dot_dimension_numbers<[1], [0], [0], [1], [0, 0, 1, 1], [], []>} : vector<16x97xf32>, vector<97x64xf32>, vector<16x64xf32> -> vector<16x64xf32>
    %cst_14 = arith.constant 0.000000e+00 : f32
    %48 = vector.broadcast %cst_14 : f32 to vector<16x64xf32>
    %49 = arith.maximumf %47, %48 : vector<16x64xf32>
    %50 = vector.extract_strided_slice %49 {offsets = [0, 0], sizes = [1, 64], strides = [1, 1]} : vector<16x64xf32> to vector<1x64xf32>
    %51 = vector.extract_strided_slice %49 {offsets = [1, 0], sizes = [1, 64], strides = [1, 1]} : vector<16x64xf32> to vector<1x64xf32>
    %52 = vector.extract_strided_slice %49 {offsets = [2, 0], sizes = [1, 64], strides = [1, 1]} : vector<16x64xf32> to vector<1x64xf32>
    %53 = vector.extract_strided_slice %49 {offsets = [3, 0], sizes = [1, 64], strides = [1, 1]} : vector<16x64xf32> to vector<1x64xf32>
    %54 = vector.extract_strided_slice %49 {offsets = [4, 0], sizes = [1, 64], strides = [1, 1]} : vector<16x64xf32> to vector<1x64xf32>
    %55 = vector.extract_strided_slice %49 {offsets = [5, 0], sizes = [1, 64], strides = [1, 1]} : vector<16x64xf32> to vector<1x64xf32>
    %56 = vector.extract_strided_slice %49 {offsets = [6, 0], sizes = [1, 64], strides = [1, 1]} : vector<16x64xf32> to vector<1x64xf32>
    %57 = vector.extract_strided_slice %49 {offsets = [7, 0], sizes = [1, 64], strides = [1, 1]} : vector<16x64xf32> to vector<1x64xf32>
    %58 = tpu.concatenate %50, %51, %52, %53, %54, %55, %56, %57 in 1 : vector<1x64xf32>, vector<1x64xf32>, vector<1x64xf32>, vector<1x64xf32>, vector<1x64xf32>, vector<1x64xf32>, vector<1x64xf32>, vector<1x64xf32> -> vector<1x512xf32>
    %59 = vector.extract_strided_slice %49 {offsets = [8, 0], sizes = [1, 64], strides = [1, 1]} : vector<16x64xf32> to vector<1x64xf32>
    %60 = vector.extract_strided_slice %49 {offsets = [9, 0], sizes = [1, 64], strides = [1, 1]} : vector<16x64xf32> to vector<1x64xf32>
    %61 = vector.extract_strided_slice %49 {offsets = [10, 0], sizes = [1, 64], strides = [1, 1]} : vector<16x64xf32> to vector<1x64xf32>
    %62 = vector.extract_strided_slice %49 {offsets = [11, 0], sizes = [1, 64], strides = [1, 1]} : vector<16x64xf32> to vector<1x64xf32>
    %63 = vector.extract_strided_slice %49 {offsets = [12, 0], sizes = [1, 64], strides = [1, 1]} : vector<16x64xf32> to vector<1x64xf32>
    %64 = vector.extract_strided_slice %49 {offsets = [13, 0], sizes = [1, 64], strides = [1, 1]} : vector<16x64xf32> to vector<1x64xf32>
    %65 = vector.extract_strided_slice %49 {offsets = [14, 0], sizes = [1, 64], strides = [1, 1]} : vector<16x64xf32> to vector<1x64xf32>
    %66 = vector.extract_strided_slice %49 {offsets = [15, 0], sizes = [1, 64], strides = [1, 1]} : vector<16x64xf32> to vector<1x64xf32>
    %67 = tpu.concatenate %59, %60, %61, %62, %63, %64, %65, %66 in 1 : vector<1x64xf32>, vector<1x64xf32>, vector<1x64xf32>, vector<1x64xf32>, vector<1x64xf32>, vector<1x64xf32>, vector<1x64xf32>, vector<1x64xf32> -> vector<1x512xf32>
    %68 = tpu.concatenate %58, %67 in 0 : vector<1x512xf32>, vector<1x512xf32> -> vector<2x512xf32>
    %cst_15 = arith.constant 1.000000e+00 : f32
    %69 = vector.broadcast %cst_15 : f32 to vector<2x1xf32>
    %70 = tpu.concatenate %68, %69 in 1 : vector<2x512xf32>, vector<2x1xf32> -> vector<2x513xf32>
    %cst_16 = arith.constant dense<0.000000e+00> : vector<2x64xf32>
    %71 = tpu.matmul %70, %2, %cst_16 {dimension_numbers = #tpu.dot_dimension_numbers<[1], [0], [0], [1], [0, 0, 1, 1], [], []>} : vector<2x513xf32>, vector<513x64xf32>, vector<2x64xf32> -> vector<2x64xf32>
    %cst_17 = arith.constant 0.000000e+00 : f32
    %72 = vector.broadcast %cst_17 : f32 to vector<2x64xf32>
    %73 = arith.maximumf %71, %72 : vector<2x64xf32>
    %cst_18 = arith.constant 1.000000e+00 : f32
    %74 = vector.broadcast %cst_18 : f32 to vector<2x1xf32>
    %75 = tpu.concatenate %73, %74 in 1 : vector<2x64xf32>, vector<2x1xf32> -> vector<2x65xf32>
    %cst_19 = arith.constant dense<0.000000e+00> : vector<2x1xf32>
    %76 = tpu.matmul %75, %3, %cst_19 {dimension_numbers = #tpu.dot_dimension_numbers<[1], [0], [0], [1], [0, 0, 1, 1], [], []>} : vector<2x65xf32>, vector<65x1xf32>, vector<2x1xf32> -> vector<2x1xf32>
    %cst_20 = arith.constant 0.000000e+00 : f32
    %77 = vector.broadcast %cst_20 : f32 to vector<2x1xf32>
    %78 = arith.subf %77, %76 : vector<2x1xf32>
    %79 = math.exp %78 : vector<2x1xf32>
    %cst_21 = arith.constant 1.000000e+00 : f32
    %80 = vector.broadcast %cst_21 : f32 to vector<2x1xf32>
    %81 = arith.addf %80, %79 : vector<2x1xf32>
    %cst_22 = arith.constant 1.000000e+00 : f32
    %82 = vector.broadcast %cst_22 : f32 to vector<2x1xf32>
    %83 = arith.divf %82, %81 : vector<2x1xf32>
    %c0_23 = arith.constant 0 : index
    %c0_24 = arith.constant 0 : index
    %84 = vector.load %arg2[%c0_23, %c0_24] : memref<2x1xf32, #tpu.memory_space<vmem>>, vector<2x1xf32>
    tpu.vector_store %arg2[%c0_23, %c0_24], %83 {strides = array<i32>} : memref<2x1xf32, #tpu.memory_space<vmem>>, vector<2x1xf32>,
    return
  }
}

</mosaic_0001>

<bundles_post_ra>
// kernel: cartpole_forward.1
= control target key start
LH: loop header
LB: loop body
LE: loop exit
PB: predicated region body
PF: predicated region fallthrough
CT: control target
= control target key end

     0   :  { %vm118_vm0 = vcmask 1044480   ;;  %vm105_vm1 = vcmask 171008   ;;  %vm254_vm2 = vcmask 1040384   ;;  %v213_v15 = vlaneseq  ;;  %s977_s20 = smov 32   ;;  %s978_s21 = smov 64   ;;  %s1328_s1 = inlined_call_operand.vmem [shape: f32[720,64], index: 1, kind: input, shape index: {}]   ;;  %s1329_s0 = inlined_call_operand.vmem [shape: f32[32,21], index: 0, kind: input, shape index: {}]   ;;  %s1330_s2 = inlined_call_operand.vmem [shape: f32[2,1], index: 2, kind: output, shape index: {}]  }
   0x1   :  { %v13_v0 = vld [vmem:[%s1328_s1 + $0x10] sm:$0x1f]  ;;  %v12_v1 = vld [vmem:[%s1328_s1 + $0x8] sm:$0xff]  ;;  %v101_v2 = vld [vmem:[%s1329_s0] sm:$0xff]  ;;  %v976_v35 = vmov 0.0   ;;  %vm263_vm6 = vcmask 1046528  }
   0x2   :  { %880 = vmatprep.subr.msk.mxu0 %vm118_vm0, %v13_v0  ;;  %v11_v3 = vld [vmem:[%s1328_s1] sm:$0xff]  ;;  %886 = vmatprep.mubr.msk.f32.mxu0 %vm105_vm1, %v101_v2  ;;  %v102_v4 = vld [vmem:[%s1329_s0 + $0x8] sm:$0xff]  ;;  %v103_v5 = vld [vmem:[%s1329_s0 + $0x10] sm:$0xff]  ;;  %v214_v16 = vshrl.u32 %v213_v15, 7  ;;  %vm286_vm8 = vcmask 261120   ;;  %vm289_vm9 = vcmask 523264  }
   0x3   :  { %881 = vmatpush3.msk.msra.mxu0 %vm118_vm0, %v13_v0  ;;  %v104_v6 = vld [vmem:[%s1329_s0 + $0x18] sm:$0xff]  ;;  %v25_v8 = vld [vmem:[%s1328_s1 + $0x70] sm:$0xff]  ;;  %v24_v9 = vld [vmem:[%s1328_s1 + $0x68] sm:$0xff]  ;;  %vm292_vm10 = vcmask 785408   ;;  %vm295_vm11 = vcmask 793600   ;;  %vm979_vm12 = vmmov 0  }
   0x4   :  { %882 = vmatprep.subr.mxu0 %v12_v1  ;;  %v26_v7 = vld [vmem:[%s1328_s1 + $0x78] sm:$0x1]  ;;  %v23_v10 = vld [vmem:[%s1328_s1 + $0x60] sm:$0xff]  ;;  %v21_v12 = vld [vmem:[%s1328_s1 + $0x50] sm:$0xff]  ;;  %v215_v20 = vadd.s32 8, %v214_v16  ;;  %v220_v22 = vand.u32 7, %v214_v16 }
   0x5   :  { %883 = vmatpush3.msra.mxu0 %v12_v1  ;;  %892 = vmatprep.subr.msk.mxu1 %vm254_vm2, %v26_v7  ;;  %v22_v11 = vld [vmem:[%s1328_s1 + $0x58] sm:$0xff]  ;;  %v20_v13 = vld [vmem:[%s1328_s1 + $0x48] sm:$0xff]  ;;  %v19_v14 = vld [vmem:[%s1328_s1 + $0x40] sm:$0xff]  ;;  %vm452_vm13 = vcmask 7168   ;;  %vm671_vm14 = vcmask 531456   ;;  %vm754_vm15 = vcmask 1024  }
   0x6   :  { %884 = vmatprep.subr.mxu0 %v11_v3  ;;  %893 = vmatpush3.msk.msra.mxu1 %vm254_vm2, %v26_v7  ;;  %v18_v17 = vld [vmem:[%s1328_s1 + $0x38] sm:$0xff]  ;;  %v17_v18 = vld [vmem:[%s1328_s1 + $0x30] sm:$0xff]  ;;  %v16_v23 = vld [vmem:[%s1328_s1 + $0x28] sm:$0xff]  ;;  %v227_v28 = vand.u32 7, %v215_v20  ;;  %vm240_vm3 = vcmp.ne.s32.totalorder %v220_v22, 0  ;;  %vm246_vm4 = vcmp.ne.s32.totalorder %v220_v22, 7 }
   0x7   :  { %885 = vmatpush3.msra.mxu0 %v11_v3  ;;  %894 = vmatprep.subr.mxu1 %v25_v8  ;;  %v15_v24 = vld [vmem:[%s1328_s1 + $0x20] sm:$0xff]  ;;  %v14_v30 = vld [vmem:[%s1328_s1 + $0x18] sm:$0xff]  ;;  %v767_v36 = vsel %vm246_vm4, 1.0, %v976_v35  ;;  %v765_v37 = vsel %vm240_vm3, 1.0, %v976_v35  ;;  %v57_v2 = vld [vmem:[%s1328_s1 + $0x170] sm:$0xff] }
   0x8   :  { %887 = vmatmul.mubr.msk.f32.vlgmr.msra.gmra.mxu0 %vm105_vm1, %v102_v4  ;;  %895 = vmatpush3.msra.mxu1 %v25_v8  ;;  %vm241_vm5 = vcmp.ne.s32.totalorder %v227_v28, 0  ;;  %vm247_vm7 = vcmp.ne.s32.totalorder %v227_v28, 7  ;;  %v58_v62 = vld [vmem:[%s1328_s1 + $0x178] sm:$0xff]  ;;  %v89_v3 = vld [vmem:[%s1328_s1 + $0x270] sm:$0xff]  ;;  %v88_v7 = vld [vmem:[%s1328_s1 + $0x268] sm:$0xff] }
   0x9   :  { %889 = vmatprep.mubr.msk.f32.mxu0 %vm105_vm1, %v103_v5  ;;  %896 = vmatprep.subr.mxu1 %v24_v9  ;;  %v766_v38 = vsel %vm241_vm5, 1.0, %v976_v35  ;;  %v768_v49 = vsel %vm247_vm7, 1.0, %v976_v35  ;;  %v90_v63 = vld [vmem:[%s1328_s1 + $0x278] sm:$0xff]  ;;  %v41_v4 = vld [vmem:[%s1328_s1 + $0xf0] sm:$0xff]  ;;  %v40_v8 = vld [vmem:[%s1328_s1 + $0xe8] sm:$0xff] }
   0xa   :  { %897 = vmatpush3.msra.mxu1 %v24_v9  ;;  %v42_v0 = vld [vmem:[%s1328_s1 + $0xf8] sm:$0xff]  ;;  %798 = vmatprep.subr.mxu0 %v58_v62  ;;  %v73_v5 = vld [vmem:[%s1328_s1 + $0x1f0] sm:$0xff]  ;;  %v72_v9 = vld [vmem:[%s1328_s1 + $0x1e8] sm:$0xff] }
   0xb   :  { %898 = vmatprep.subr.mxu1 %v23_v10  ;;  %v74_v1 = vld [vmem:[%s1328_s1 + $0x1f8] sm:$0xff]  ;;  %799 = vmatpush3.msra.mxu0 %v42_v0  ;;  %v37_v20 = vld [vmem:[%s1328_s1 + $0xd0] sm:$0xff]  ;;  %v52_v22 = vld [vmem:[%s1328_s1 + $0x148] sm:$0xff] }
   0xc   :  { %890 = vmatmul.mubr.msk.f32.gmra.mxu0 %vm105_vm1, %v104_v6  ;;  %899 = vmatpush3.msra.mxu1 %v23_v10  ;;  %v56_v6 = vld [vmem:[%s1328_s1 + $0x168] sm:$0xff]  ;;  %v55_v10 = vld [vmem:[%s1328_s1 + $0x160] sm:$0xff]  ;;  %v86_v15 = vld [vmem:[%s1328_s1 + $0x258] sm:$0xff] }
   0xd   :  { %900 = vmatprep.subr.mxu1 %v22_v11  ;;  %800 = vmatprep.subr.mxu0 %v57_v2  ;;  %v38_v16 = vld [vmem:[%s1328_s1 + $0xd8] sm:$0xff]  ;;  %v35_v28 = vld [vmem:[%s1328_s1 + $0xc0] sm:$0xff] }
   0xe   :  { %901 = vmatpush3.msra.mxu1 %v22_v11  ;;  %801 = vmatpush3.msra.mxu0 %v41_v4  ;;  %v87_v11 = vld [vmem:[%s1328_s1 + $0x260] sm:$0xff] }
   0xf   :  { %902 = vmatprep.subr.mxu1 %v21_v12  ;;  %802 = vmatprep.subr.mxu0 %v56_v6  ;;  %v75_v62 = vld [vmem:[%s1328_s1 + $0x200] sm:$0xff] }
  0x10   :  { %903 = vmatpush3.msra.mxu1 %v21_v12  ;;  %v39_v12 = vld [vmem:[%s1328_s1 + $0xe0] sm:$0xff]  ;;  %803 = vmatpush3.msra.mxu0 %v40_v8 }
  0x11   :  { %904 = vmatprep.subr.mxu1 %v20_v13  ;;  %804 = vmatprep.subr.mxu0 %v55_v10 }
  0x12   :  { %905 = vmatpush3.msra.mxu1 %v20_v13  ;;  %v71_v13 = vld [vmem:[%s1328_s1 + $0x1e0] sm:$0xff]  ;;  %805 = vmatpush3.msra.mxu0 %v39_v12 }
  0x13   :  { %906 = vmatprep.subr.mxu1 %v19_v14 }
  0x14   :  { %907 = vmatpush3.msra.mxu1 %v19_v14  ;;  %v54_v14 = vld [vmem:[%s1328_s1 + $0x158] sm:$0xff] }
  0x15   :  { %908 = vmatprep.subr.mxu1 %v18_v17  ;;  %806 = vmatprep.subr.mxu0 %v54_v14 }
  0x16   :  { %909 = vmatpush3.msra.mxu1 %v18_v17  ;;  %v70_v17 = vld [vmem:[%s1328_s1 + $0x1d8] sm:$0xff]  ;;  %807 = vmatpush3.msra.mxu0 %v38_v16 }
  0x17   :  { %910 = vmatprep.subr.mxu1 %v17_v18 }
  0x18   :  { %911 = vmatpush3.msra.mxu1 %v17_v18  ;;  %v53_v18 = vld [vmem:[%s1328_s1 + $0x150] sm:$0xff] }
  0x19   :  { %912 = vmatprep.subr.mxu1 %v16_v23  ;;  %808 = vmatprep.subr.mxu0 %v53_v18 }
  0x1a   :  { %913 = vmatpush3.msra.mxu1 %v16_v23  ;;  %v84_v23 = vld [vmem:[%s1328_s1 + $0x248] sm:$0xff]  ;;  %809 = vmatpush3.msra.mxu0 %v37_v20 }
  0x1b   :  { %914 = vmatprep.subr.mxu1 %v15_v24  ;;  %810 = vmatprep.subr.mxu0 %v52_v22 }
  0x1c   :  { %915 = vmatpush3.msra.mxu1 %v15_v24  ;;  %v36_v24 = vld [vmem:[%s1328_s1 + $0xc8] sm:$0xff] }
  0x1d   :  { %916 = vmatprep.subr.mxu1 %v14_v30  ;;  %811 = vmatpush3.msra.mxu0 %v36_v24 }
  0x1e   :  { %917 = vmatpush3.msra.mxu1 %v14_v30  ;;  %v50_v30 = vld [vmem:[%s1328_s1 + $0x138] sm:$0xff] }
  0x1f   :  { %833 = vmatprep.subr.mxu1 %v90_v63  ;;  %v27_v63 = vld [vmem:[%s1328_s1 + $0x80] sm:$0xff] }
  0xc8   :  { %v888_v19 = vpop.f32.mrf.mxu0 }
  0xc9   :  { %v208_v26 = vmax.f32 %v888_v19, 0.0  ;;  %v85_v19 = vld [vmem:[%s1328_s1 + $0x250] sm:$0xff] }
  0xca   :  { %v188_v21 = vpop.f32.mrf.mxu0 }
  0xcb   :  { %v207_v31 = vmax.f32 %v188_v21, 0.0  ;;  %v69_v21 = vld [vmem:[%s1328_s1 + $0x1d0] sm:$0xff] }
  0xcc   :  { %v891_v25 = vpop.f32.mrf.mxu0 }
  0xcd   :  { %v210_v27 = vmax.f32 %v891_v25, 0.0  ;;  %v68_v25 = vld [vmem:[%s1328_s1 + $0x1c8] sm:$0xff] }
  0xce   :  { %v198_v29 = vpop.f32.mrf.mxu0 }
  0xcf   :  { %v212_v32 = vmax.f32 %v208_v26, %v210_v27  ;;  %v209_v33 = vmax.f32 %v198_v29, 0.0  ;;  %v51_v26 = vld [vmem:[%s1328_s1 + $0x140] sm:$0xff] }
  0xd0   :  { %v83_v27 = vld [vmem:[%s1328_s1 + $0x240] sm:$0xff]  ;;  %812 = vmatprep.subr.mxu0 %v51_v26 }
  0xd1   :  { %v211_v34 = vmax.f32 %v207_v31, %v209_v33  ;;  %v256_v39 = vrot.slane %v212_v32, 7  ;;  %v265_v42 = vrot.slane %v212_v32, 1  ;;  %v67_v29 = vld [vmem:[%s1328_s1 + $0x1c0] sm:$0xff]  ;;  %v82_v31 = vld [vmem:[%s1328_s1 + $0x238] sm:$0xff]  ;;  %813 = vmatpush3.msra.mxu0 %v35_v28 }
  0xd2   :  { %v66_v33 = vld [vmem:[%s1328_s1 + $0x1b8] sm:$0xff]  ;;  %814 = vmatprep.subr.mxu0 %v50_v30 }
  0xd3   :  { %v255_v40 = vrot.slane %v211_v34, 7  ;;  %272 = vrot.lane.b32.xlu0 %v211_v34, %s977_s20  ;;  %v264_v41 = vrot.slane %v211_v34, 1  ;;  %v269_v50 = vsel %vm263_vm6, %v265_v42, 0.0  ;;  %v49_v34 = vld [vmem:[%s1328_s1 + $0x130] sm:$0xff] }
  0xd4   :  { %v271_v51 = vmul.f32 %v768_v49, %v269_v50  ;;  %v30_v49 = vld [vmem:[%s1328_s1 + $0x98] sm:$0xff] }
  0xd5   :  { %v266_v43 = vsel %vm263_vm6, %v264_v41, %v265_v42  ;;  %v260_v44 = vsel %vm254_vm2, 0.0, %v255_v40  ;;  %v257_v45 = vsel %vm254_vm2, %v255_v40, %v256_v39  ;;  %v48_v39 = vld [vmem:[%s1328_s1 + $0x128] sm:$0xff]  ;;  %v62_v50 = vld [vmem:[%s1328_s1 + $0x198] sm:$0xff] }
  0xd6   :  { %v270_v46 = vmul.f32 %v767_v36, %v266_v43  ;;  %v261_v47 = vmul.f32 %v765_v37, %v260_v44  ;;  %v262_v48 = vmul.f32 %v766_v38, %v257_v45  ;;  %v81_v36 = vld [vmem:[%s1328_s1 + $0x230] sm:$0xff]  ;;  %v80_v40 = vld [vmem:[%s1328_s1 + $0x228] sm:$0xff]  ;;  %v47_v43 = vld [vmem:[%s1328_s1 + $0x120] sm:$0xff] }
  0xd7   :  { %274 = vrot.lane.b32.xlu0 %v212_v32, %s977_s20  ;;  %v34_v32 = vld [vmem:[%s1328_s1 + $0xb8] sm:$0xff]  ;;  %v33_v37 = vld [vmem:[%s1328_s1 + $0xb0] sm:$0xff]  ;;  %v32_v41 = vld [vmem:[%s1328_s1 + $0xa8] sm:$0xff] }
  0xd8   :  { %280 = vrot.lane.b32.xlu1 %v270_v46, %s978_s21  ;;  %v65_v38 = vld [vmem:[%s1328_s1 + $0x1b0] sm:$0xff]  ;;  %815 = vmatpush3.msra.mxu0 %v34_v32  ;;  %v64_v42 = vld [vmem:[%s1328_s1 + $0x1a8] sm:$0xff]  ;;  %v79_v44 = vld [vmem:[%s1328_s1 + $0x220] sm:$0xff] }
  0xd9   :  { %816 = vmatprep.subr.mxu0 %v49_v34  ;;  %v31_v45 = vld [vmem:[%s1328_s1 + $0xa0] sm:$0xff] }
  0xda   :  { %817 = vmatpush3.msra.mxu0 %v33_v37  ;;  %v63_v46 = vld [vmem:[%s1328_s1 + $0x1a0] sm:$0xff] }
  0xdb   :  { %818 = vmatprep.subr.mxu0 %v48_v39 }
  0xdc   :  { %282 = vrot.lane.b32.xlu1 %v271_v51, %s978_s21  ;;  %819 = vmatpush3.msra.mxu0 %v32_v41  ;;  %v45_v51 = vld [vmem:[%s1328_s1 + $0x110] sm:$0xff] }
  0xdd   :  { %820 = vmatprep.subr.mxu0 %v47_v43 }
  0xde   :  { %821 = vmatpush3.msra.mxu0 %v31_v45 }
 0x145   :  { %v273_v52 = vpop.permute.xlu0 %272 }
 0x146   :  { %v287_v53 = vsel %vm286_vm8, %v261_v47, %v273_v52  ;;  %v46_v47 = vld [vmem:[%s1328_s1 + $0x118] sm:$0xff]  ;;  %v77_v52 = vld [vmem:[%s1328_s1 + $0x210] sm:$0xff] }
 0x147   :  { %822 = vmatprep.subr.mxu0 %v46_v47 }
 0x148   :  { %823 = vmatpush3.msra.mxu0 %v30_v49 }
 0x149   :  { %v275_v55 = vpop.permute.xlu0 %274  ;;  %824 = vmatprep.subr.mxu0 %v45_v51  ;;  %v100_v51 = vld [vmem:[%s1328_s1 + $0x2c8] sm:$0x1] }
 0x14a   :  { %v281_v54 = vpop.permute.xlu1 %280  ;;  %v288_v58 = vsel %vm286_vm8, %v262_v48, %v275_v55  ;;  %v78_v48 = vld [vmem:[%s1328_s1 + $0x218] sm:$0xff]  ;;  %v44_v55 = vld [vmem:[%s1328_s1 + $0x108] sm:$0xff] }
 0x14b   :  { %v290_v56 = vsel %vm289_vm9, %v287_v53, %v281_v54  ;;  %v29_v53 = vld [vmem:[%s1328_s1 + $0x90] sm:$0xff] }
 0x14c   :  { %v293_v57 = vsel %vm292_vm10, %v290_v56, 1.0  ;;  %v61_v54 = vld [vmem:[%s1328_s1 + $0x190] sm:$0xff]  ;;  %825 = vmatpush3.msra.mxu0 %v29_v53  ;;  %v76_v56 = vld [vmem:[%s1328_s1 + $0x208] sm:$0xff]  ;;  %v99_v53 = vld [vmem:[%s1328_s1 + $0x2c0] sm:$0xff] }
 0x14d   :  { %918 = vmatprep.mubr.msk.f32.mxu1 %vm295_vm11, %v293_v57  ;;  %826 = vmatprep.subr.mxu0 %v44_v55  ;;  %v97_v55 = vld [vmem:[%s1328_s1 + $0x2b0] sm:$0xff] }
 0x14e   :  { %v283_v59 = vpop.permute.xlu1 %282 }
 0x14f   :  { %v291_v60 = vsel %vm289_vm9, %v288_v58, %v283_v59  ;;  %v28_v58 = vld [vmem:[%s1328_s1 + $0x88] sm:$0xff] }
 0x150   :  { %v294_v61 = vsel %vm292_vm10, %v291_v60, 1.0  ;;  %v60_v59 = vld [vmem:[%s1328_s1 + $0x188] sm:$0xff]  ;;  %827 = vmatpush3.msra.mxu0 %v28_v58  ;;  %v94_v58 = vld [vmem:[%s1328_s1 + $0x298] sm:$0xff] }
 0x151   :  { %919 = vmatmul.mubr.msk.f32.vlgmr.msra.gmra.mxu1 %vm295_vm11, %v294_v61  ;;  %v43_v61 = vld [vmem:[%s1328_s1 + $0x100] sm:$0xff] }
 0x152   :  { %834 = vmatpush3.msra.mxu1 %v74_v1  ;;  %828 = vmatprep.subr.mxu0 %v43_v61  ;;  %v59_v1 = vld [vmem:[%s1328_s1 + $0x180] sm:$0xff] }
 0x153   :  { %835 = vmatprep.subr.mxu1 %v89_v3  ;;  %829 = vmatpush3.msra.mxu0 %v27_v63 }
 0x154   :  { %836 = vmatpush3.msra.mxu1 %v73_v5  ;;  %921 = vmatprep.subr.mxu0 %v976_v35 }
 0x155   :  { %837 = vmatprep.subr.mxu1 %v88_v7 }
 0x156   :  { %838 = vmatpush3.msra.mxu1 %v72_v9 }
 0x157   :  { %839 = vmatprep.subr.mxu1 %v87_v11 }
 0x158   :  { %840 = vmatpush3.msra.mxu1 %v71_v13 }
 0x159   :  { %841 = vmatprep.subr.mxu1 %v86_v15 }
 0x15a   :  { %842 = vmatpush3.msra.mxu1 %v70_v17 }
 0x15b   :  { %843 = vmatprep.subr.mxu1 %v85_v19 }
 0x15c   :  { %844 = vmatpush3.msra.mxu1 %v69_v21 }
 0x15d   :  { %845 = vmatprep.subr.mxu1 %v84_v23 }
 0x15e   :  { %846 = vmatpush3.msra.mxu1 %v68_v25 }
 0x15f   :  { %847 = vmatprep.subr.mxu1 %v83_v27 }
 0x160   :  { %848 = vmatpush3.msra.mxu1 %v67_v29 }
 0x161   :  { %849 = vmatprep.subr.mxu1 %v82_v31 }
 0x162   :  { %850 = vmatpush3.msra.mxu1 %v66_v33 }
 0x163   :  { %851 = vmatprep.subr.mxu1 %v81_v36 }
 0x164   :  { %852 = vmatpush3.msra.mxu1 %v65_v38 }
 0x165   :  { %853 = vmatprep.subr.mxu1 %v80_v40 }
 0x166   :  { %854 = vmatpush3.msra.mxu1 %v64_v42 }
 0x167   :  { %855 = vmatprep.subr.mxu1 %v79_v44 }
 0x168   :  { %856 = vmatpush3.msra.mxu1 %v63_v46 }
 0x169   :  { %857 = vmatprep.subr.mxu1 %v78_v48  ;;  %v91_v48 = vld [vmem:[%s1328_s1 + $0x280] sm:$0x1] }
 0x16a   :  { %858 = vmatpush3.msra.mxu1 %v62_v50 }
 0x16b   :  { %859 = vmatprep.subr.mxu1 %v77_v52  ;;  %v980_v52 = vmov 1.0  }
 0x16c   :  { %860 = vmatpush3.msra.mxu1 %v61_v54  ;;  %v98_v54 = vld [vmem:[%s1328_s1 + $0x2b8] sm:$0xff] }
 0x16d   :  { %861 = vmatprep.subr.mxu1 %v76_v56  ;;  %v96_v56 = vld [vmem:[%s1328_s1 + $0x2a8] sm:$0xff] }
 0x16e   :  { %862 = vmatpush3.msra.mxu1 %v60_v59  ;;  %v93_v59 = vld [vmem:[%s1328_s1 + $0x290] sm:$0xff] }
 0x16f   :  { %863 = vmatprep.subr.mxu1 %v75_v62 }
 0x170   :  { %864 = vmatpush3.msra.mxu1 %v59_v1 }
 0x211   :  { %v920_v57 = vpop.f32.mrf.mxu1 }
 0x212   :  { %v381_v60 = vmax.f32 %v920_v57, 0.0  ;;  %v95_v57 = vld [vmem:[%s1328_s1 + $0x2a0] sm:$0xff] }
 0x213   :  { %v371_v0 = vpop.f32.mrf.mxu1 }
 0x214   :  { %v380_v2 = vmax.f32 %v371_v0, 0.0  ;;  %v416_v3 = vrot.slane %v381_v60, 3  ;;  %v428_v4 = vrot.slane %v381_v60, 7  ;;  %v410_v5 = vrot.slane %v381_v60, 1 }
 0x215   :  { %v422_v6 = vrot.slane %v381_v60, 5  ;;  %v426_v16 = vrot.slane %v381_v60, 6  ;;  %v414_v19 = vrot.slane %v381_v60, 2  ;;  %v420_v21 = vrot.slane %v381_v60, 4 }
 0x216   :  { %v952_v7 = vpack.i.bf16 %v428_v4, %v416_v3  ;;  %v389_v8 = vrot.slane %v380_v2, 3  ;;  %v401_v9 = vrot.slane %v380_v2, 7  ;;  %v383_v11 = vrot.slane %v380_v2, 1 }
 0x217   :  { %v957_v10 = vpack.i.bf16 %v422_v6, %v410_v5  ;;  %v395_v12 = vrot.slane %v380_v2, 5  ;;  %v393_v29 = vrot.slane %v380_v2, 4  ;;  %v387_v30 = vrot.slane %v380_v2, 2 }
 0x218   :  { %953 = vrot.lane.b32.xlu0 %v952_v7, %s978_s21  ;;  %v962_v13 = vpack.i.bf16 %v401_v9, %v389_v8  ;;  %v399_v34 = vrot.slane %v380_v2, 6 }
 0x219   :  { %958 = vrot.lane.b32.xlu1 %v957_v10, %s978_s21  ;;  %v967_v14 = vpack.i.bf16 %v395_v12, %v383_v11 }
 0x21c   :  { %963 = vrot.lane.b32.xlu0 %v962_v13, %s978_s21 }
 0x21d   :  { %968 = vrot.lane.b32.xlu1 %v967_v14, %s978_s21 }
 0x28a   :  { %v954_v15 = vpop.permute.xlu0 %953 }
 0x28b   :  { %v956_v17 = vunpack.i.h.bf16 %v954_v15  ;;  %v955_v18 = vunpack.i.l.bf16 %v954_v15  ;;  %v959_v20 = vpop.permute.xlu1 %958 }
 0x28c   :  { %v961_v22 = vunpack.i.h.bf16 %v959_v20  ;;  %v960_v23 = vunpack.i.l.bf16 %v959_v20 }
 0x28d   :  { %v435_v24 = vsel %vm289_vm9, %v426_v16, %v956_v17  ;;  %v433_v25 = vsel %vm289_vm9, %v414_v19, %v955_v18 }
 0x28e   :  { %v434_v26 = vsel %vm289_vm9, %v420_v21, %v961_v22  ;;  %v432_v27 = vsel %vm289_vm9, %v381_v60, %v960_v23  ;;  %v964_v28 = vpop.permute.xlu0 %963  ;;  %v441_v38 = vrot.slane %v433_v25, 7  ;;  %v443_v39 = vrot.slane %v435_v24, 7  ;;  %v92_v60 = vld [vmem:[%s1328_s1 + $0x288] sm:$0xff] }
 0x28f   :  { %v966_v31 = vunpack.i.h.bf16 %v964_v28  ;;  %v965_v32 = vunpack.i.l.bf16 %v964_v28  ;;  %v969_v33 = vpop.permute.xlu1 %968  ;;  %v442_v40 = vrot.slane %v434_v26, 7  ;;  %v440_v41 = vrot.slane %v432_v27, 7 }
 0x290   :  { %v971_v36 = vunpack.i.h.bf16 %v969_v33  ;;  %v970_v37 = vunpack.i.l.bf16 %v969_v33 }
 0x291   :  { %v406_v42 = vsel %vm289_vm9, %v387_v30, %v965_v32  ;;  %v408_v43 = vsel %vm289_vm9, %v399_v34, %v966_v31 }
 0x292   :  { %v407_v44 = vsel %vm289_vm9, %v393_v29, %v971_v36  ;;  %v405_v45 = vsel %vm289_vm9, %v380_v2, %v970_v37  ;;  %v449_v46 = vsel %vm254_vm2, %v406_v42, %v441_v38  ;;  %v451_v47 = vsel %vm254_vm2, %v408_v43, %v443_v39 }
 0x293   :  { %523 = vmatprep.mubr.f32.mxu0 %v449_v46  ;;  %593 = vmatprep.mubr.f32.mxu1 %v451_v47  ;;  %v448_v49 = vsel %vm254_vm2, %v405_v45, %v440_v41  ;;  %v450_v50 = vsel %vm254_vm2, %v407_v44, %v442_v40 }
 0x294   :  { %524 = vmatmul.mubr.f32.vlgmr.msra.gmra.mxu0 %v448_v49  ;;  %594 = vmatmul.mubr.f32.vlgmr.msra.gmra.mxu1 %v450_v50 }
 0x295   :  { %922 = vmatpush3.msk.msra.mxu0 %vm254_vm2, %v91_v48  ;;  %923 = vmatprep.mubr.msk.f32.mxu0 %vm979_vm12, %v976_v35 }
 0x296   :  { %926 = vmatprep.subr.mxu0 %v976_v35 }
 0x298   :  { %924 = vmatmul.mubr.msk.f32.vlgmr.msra.gmra.mxu0 %vm452_vm13, %v980_v52 }
 0x299   :  { %927 = vmatpush3.msk.msra.mxu0 %vm254_vm2, %v100_v51  ;;  %944 = vmatprep.mubr.msk.f32.mxu0 %vm979_vm12, %v976_v35 }
 0x29a   :  { %928 = vmatprep.subr.mxu0 %v976_v35 }
 0x29b   :  { %929 = vmatpush3.msra.mxu0 %v99_v53 }
 0x29c   :  { %930 = vmatprep.subr.mxu0 %v976_v35 }
 0x29d   :  { %931 = vmatpush3.msra.mxu0 %v98_v54 }
 0x29e   :  { %932 = vmatprep.subr.mxu0 %v976_v35 }
 0x29f   :  { %933 = vmatpush3.msra.mxu0 %v97_v55 }
 0x2a0   :  { %934 = vmatprep.subr.mxu0 %v976_v35 }
 0x2a1   :  { %935 = vmatpush3.msra.mxu0 %v96_v56 }
 0x2a2   :  { %936 = vmatprep.subr.mxu0 %v976_v35 }
 0x2a3   :  { %937 = vmatpush3.msra.mxu0 %v95_v57 }
 0x2a4   :  { %938 = vmatprep.subr.mxu0 %v976_v35 }
 0x2a5   :  { %939 = vmatpush3.msra.mxu0 %v94_v58 }
 0x2a6   :  { %940 = vmatprep.subr.mxu0 %v976_v35 }
 0x2a7   :  { %941 = vmatpush3.msra.mxu0 %v93_v59 }
 0x2a8   :  { %942 = vmatprep.subr.mxu0 %v976_v35 }
 0x2a9   :  { %943 = vmatpush3.msra.mxu0 %v92_v60 }
 0x354   :  { %v830_v61 = vpop.f32.mrf.mxu0  ;;  %v865_v62 = vpop.f32.mrf.mxu1 }
 0x356   :  { %v831_v63 = vpop.f32.mrf.mxu0  ;;  %v866_v0 = vpop.f32.mrf.mxu1 }
 0x357   :  { %v832_v1 = vadd.f32 %v831_v63, %v830_v61  ;;  %v867_v2 = vadd.f32 %v866_v0, %v865_v62 }
 0x358   :  { %v665_v3 = vpop.f32.mrf.mxu0 }
 0x359   :  { %v596_v4 = vadd.f32 %v867_v2, %v832_v1 }
 0x35a   :  { %v925_v5 = vpop.f32.mrf.mxu0 }
 0x35b   :  { %v666_v6 = vadd.f32 %v665_v3, %v596_v4 }
 0x35d   :  { %v669_v7 = vmax.f32 %v666_v6, 0.0 }
 0x35f   :  { %v670_v8 = vsel %vm289_vm9, %v669_v7, 1.0 }
 0x360   :  { %945 = vmatmul.mubr.msk.f32.vlgmr.msra.gmra.mxu0 %vm671_vm14, %v670_v8 }
 0x420   :  { %v744_v9 = vpop.f32.mrf.mxu0 }
 0x421   :  { %v748_v10 = vsub.f32 0.0, %v744_v9 }
 0x422   :  { %v946_v11 = vpop.f32.mrf.mxu0 }
 0x423   :  { %v749_v35 = vmul.f32 1.442695, %v748_v10 }
 0x425   :  { %972 = vpow2.f32 %v749_v35 }
 0x432   :  { %v973_v12 = vpop.eup %972 }
 0x433   :  { %v751_v13 = vadd.f32 1.0, %v973_v12 }
 0x435   :  { %974 = vrcp.f32 %v751_v13 }
 0x442   :  { %v975_v14 = vpop.eup %974 }
 0x443   :  { %755 = vst.msk [vmem:[%s1330_s2] sm:$0x3] %vm754_vm15, %v975_v14 }

</bundles_post_ra>
